<compile_context>
chip_gen: v7x
topology: tpu7x:2x2x1
jax: 0.10.0
libtpu: 0.0.40
codegen_flags: <defaults>
</compile_context>

<pallas_src>
import functools

import jax
import jax.numpy as jnp
from jax.experimental import pallas as pl
from jax.experimental.pallas import tpu as pltpu

C_IN = 64
C_OUT = 64
KH = KW = 3
KK = KH * KW * C_IN  # 576 = stacked contraction depth


def _round_up(x, m):
    return ((x + m - 1) // m) * m


def _conv_relu_kernel(x_ref, w_ref, o_ref, patches_ref, *, wp, tm):
    # x_ref:       (1, 1, C_IN, TIN)  bf16  halo'd window of the flat frame
    # w_ref:       (C_OUT, 576)       bf16  tap-stacked weights
    # o_ref:       (1, C_OUT, TM)     f32   output-frame tile (lane dense)
    # patches_ref: (576, TM)          bf16  K-stacked im2col operand (scratch)
    for dh in range(KH):
        for dw in range(KW):
            p = dh * KW + dw
            s = dh * wp + dw  # constant column shift for this tap
            patches_ref[p * C_IN:(p + 1) * C_IN, :] = x_ref[0, 0, :, s:s + tm]
    # Single deep matmul over all 9 taps, f32 accumulation on the MXU.
    acc = jnp.dot(w_ref[...], patches_ref[...],
                  preferred_element_type=jnp.float32)  # (C_OUT, TM)
    o_ref[0] = jnp.maximum(acc, 0.0).astype(o_ref.dtype)


def conv_relu_block(x_nchw, weight_oihw):
    """Forward pass of Conv_ReLU_Block.

    x_nchw:      (N, 64, H, W)  float32, NCHW (PyTorch convention)
    weight_oihw: (64, 64, 3, 3) float32, OIHW (PyTorch convention)
    returns:     (N, 64, H, W)  float32, NCHW
    """
    N, C, H, W = x_nchw.shape
    assert C == C_IN
    assert weight_oihw.shape == (C_OUT, C_IN, KH, KW)

    # ---- flat-frame geometry -------------------------------------------------
    Wp = _round_up(W + 2, 8)               # padded row pitch (sublane friendly)
    L = H * Wp                             # columns of the output frame
    tile_target = max(1024, min(6 * Wp, 8192))
    TM = _round_up(min(L, tile_target), 128)   # output columns per grid tile
    T = -(-L // TM)                        # number of column tiles
    L_pad = T * TM
    TIN = _round_up(TM + 2 * Wp + 2, 128)  # tile + conv halo
    LIN = (T - 1) * TM + TIN               # flat-frame length the kernel reads

    # ---- wrapper glue: bf16 cast, pad, flatten, halo'd windows --------------
    xb = x_nchw.astype(jnp.bfloat16)
    xp = jnp.pad(xb, ((0, 0), (0, 0), (1, 1), (1, Wp - W - 1)))  # (N,C,H+2,Wp)
    xf = xp.reshape(N, C_IN, (H + 2) * Wp)
    xf = jnp.pad(xf, ((0, 0), (0, 0), (0, LIN - (H + 2) * Wp)))  # tail safety
    # Overlapping (halo'd) column windows, one per grid tile: (N, T, C, TIN).
    x_win = jnp.stack([xf[:, :, t * TM:t * TM + TIN] for t in range(T)], axis=1)

    # Tap-stacked weights: k = (dh*3 + dw)*C_IN + ci  -> (C_OUT, 576), bf16.
    w_all = jnp.transpose(weight_oihw, (0, 2, 3, 1)).reshape(C_OUT, KK)
    w_all = w_all.astype(jnp.bfloat16)

    kernel = functools.partial(_conv_relu_kernel, wp=Wp, tm=TM)

    out_frame = pl.pallas_call(
        kernel,
        out_shape=jax.ShapeDtypeStruct((N, C_OUT, L_pad), jnp.float32),
        grid_spec=pltpu.PrefetchScalarGridSpec(
            num_scalar_prefetch=0,
            grid=(N, T),
            in_specs=[
                pl.BlockSpec((1, 1, C_IN, TIN), lambda b, t: (b, t, 0, 0)),
                pl.BlockSpec((C_OUT, KK), lambda b, t: (0, 0)),
            ],
            out_specs=pl.BlockSpec((1, C_OUT, TM), lambda b, t: (b, 0, t)),
            scratch_shapes=[pltpu.VMEM((KK, TM), jnp.bfloat16)],
        ),
        compiler_params=pltpu.CompilerParams(
            dimension_semantics=("parallel", "parallel"),
            vmem_limit_bytes=32 * 1024 * 1024,
        ),
    )(x_win, w_all)

    # Drop padded-frame garbage columns; result is already NCHW.
    out = out_frame[:, :, :L].reshape(N, C_OUT, H, Wp)[:, :, :, :W]
    return out


if __name__ == "__main__":
    key = jax.random.PRNGKey(0)
    kx, kw = jax.random.split(key)

    # Small spatial size; channels fixed at 64 by the module definition.
    N, H, W = 2, 16, 16
    x = jax.random.normal(kx, (N, C_IN, H, W), dtype=jnp.float32)

    # Deterministic VDSR-style init: kaiming-normal, std = sqrt(2 / (KH*KW*Cout)).
    std = (2.0 / (KH * KW * C_OUT)) ** 0.5
    weight = std * jax.random.normal(kw, (C_OUT, C_IN, KH, KW), dtype=jnp.float32)

    y = jax.jit(conv_relu_block)(x, weight)
    y = jax.block_until_ready(y)

    assert y.shape == (N, C_OUT, H, W)
    assert bool(jnp.all(y >= 0.0))  # ReLU post-condition

    # Reference check (f32 conv + relu); kernel uses bf16 operands -> loose tol.
    ref = jax.lax.conv_general_dilated(
        x, weight, window_strides=(1, 1), padding=((1, 1), (1, 1)),
        dimension_numbers=("NCHW", "OIHW", "NCHW"),
        precision=jax.lax.Precision.HIGHEST)
    ref = jnp.maximum(ref, 0.0)
    max_err = float(jnp.max(jnp.abs(y - ref)))
    assert max_err < 1e-1, f"max abs error too large: {max_err}"

    print("KERNEL_OK")
</pallas_src>

<mosaic_0001>
module attributes {stable_mosaic.version = 11 : i64} {
  func.func @_conv_relu_kernel(%arg0: i32, %arg1: i32, %arg2: memref<1x1x64x512xbf16, #tpu.memory_space<vmem>>, %arg3: memref<64x576xbf16, #tpu.memory_space<vmem>>, %arg4: memref<1x64x384xf32, #tpu.memory_space<vmem>>, %arg5: memref<576x384xbf16, #tpu.memory_space<vmem>>) attributes {dimension_semantics = [#tpu.dimension_semantics<parallel>, #tpu.dimension_semantics<parallel>], iteration_bounds = array<i64: 2, 1>, scalar_prefetch = 0 : i64, scratch_operands = 1 : i64, tpu.core_type = #tpu.core_type<tc>, window_params = [{transform_indices = @transform_0, window_bounds = array<i64: 1, 1, 64, 512>}, {pipeline_mode = #tpu.pipeline_mode<synchronous>, transform_indices = @transform_1, window_bounds = array<i64: 64, 576>}, {transform_indices = @transform_2, window_bounds = array<i64: 1, 64, 384>}]} {
    %c0 = arith.constant 0 : index
    %c0_0 = arith.constant 0 : index
    %c0_1 = arith.constant 0 : index
    %c0_2 = arith.constant 0 : index
    %0 = vector.load %arg2[%c0, %c0_0, %c0_1, %c0_2] : memref<1x1x64x512xbf16, #tpu.memory_space<vmem>>, vector<1x1x64x384xbf16>
    %1 = vector.shape_cast %0 : vector<1x1x64x384xbf16> to vector<64x384xbf16>
    %c0_3 = arith.constant 0 : index
    %c0_4 = arith.constant 0 : index
    %2 = vector.load %arg5[%c0_3, %c0_4] : memref<576x384xbf16, #tpu.memory_space<vmem>>, vector<64x384xbf16>
    tpu.vector_store %arg5[%c0_3, %c0_4], %1 {strides = array<i32>} : memref<576x384xbf16, #tpu.memory_space<vmem>>, vector<64x384xbf16>,
    %c0_5 = arith.constant 0 : index
    %c0_6 = arith.constant 0 : index
    %c0_7 = arith.constant 0 : index
    %c1 = arith.constant 1 : index
    %3 = vector.load %arg2[%c0_5, %c0_6, %c0_7, %c1] : memref<1x1x64x512xbf16, #tpu.memory_space<vmem>>, vector<1x1x64x384xbf16>
    %4 = vector.shape_cast %3 : vector<1x1x64x384xbf16> to vector<64x384xbf16>
    %c64 = arith.constant 64 : index
    %c0_8 = arith.constant 0 : index
    %5 = vector.load %arg5[%c64, %c0_8] : memref<576x384xbf16, #tpu.memory_space<vmem>>, vector<64x384xbf16>
    tpu.vector_store %arg5[%c64, %c0_8], %4 {strides = array<i32>} : memref<576x384xbf16, #tpu.memory_space<vmem>>, vector<64x384xbf16>,
    %c0_9 = arith.constant 0 : index
    %c0_10 = arith.constant 0 : index
    %c0_11 = arith.constant 0 : index
    %c2 = arith.constant 2 : index
    %6 = vector.load %arg2[%c0_9, %c0_10, %c0_11, %c2] : memref<1x1x64x512xbf16, #tpu.memory_space<vmem>>, vector<1x1x64x384xbf16>
    %7 = vector.shape_cast %6 : vector<1x1x64x384xbf16> to vector<64x384xbf16>
    %c128 = arith.constant 128 : index
    %c0_12 = arith.constant 0 : index
    %8 = vector.load %arg5[%c128, %c0_12] : memref<576x384xbf16, #tpu.memory_space<vmem>>, vector<64x384xbf16>
    tpu.vector_store %arg5[%c128, %c0_12], %7 {strides = array<i32>} : memref<576x384xbf16, #tpu.memory_space<vmem>>, vector<64x384xbf16>,
    %c0_13 = arith.constant 0 : index
    %c0_14 = arith.constant 0 : index
    %c0_15 = arith.constant 0 : index
    %c24 = arith.constant 24 : index
    %9 = vector.load %arg2[%c0_13, %c0_14, %c0_15, %c24] : memref<1x1x64x512xbf16, #tpu.memory_space<vmem>>, vector<1x1x64x384xbf16>
    %10 = vector.shape_cast %9 : vector<1x1x64x384xbf16> to vector<64x384xbf16>
    %c192 = arith.constant 192 : index
    %c0_16 = arith.constant 0 : index
    %11 = vector.load %arg5[%c192, %c0_16] : memref<576x384xbf16, #tpu.memory_space<vmem>>, vector<64x384xbf16>
    tpu.vector_store %arg5[%c192, %c0_16], %10 {strides = array<i32>} : memref<576x384xbf16, #tpu.memory_space<vmem>>, vector<64x384xbf16>,
    %c0_17 = arith.constant 0 : index
    %c0_18 = arith.constant 0 : index
    %c0_19 = arith.constant 0 : index
    %c25 = arith.constant 25 : index
    %12 = vector.load %arg2[%c0_17, %c0_18, %c0_19, %c25] : memref<1x1x64x512xbf16, #tpu.memory_space<vmem>>, vector<1x1x64x384xbf16>
    %13 = vector.shape_cast %12 : vector<1x1x64x384xbf16> to vector<64x384xbf16>
    %c256 = arith.constant 256 : index
    %c0_20 = arith.constant 0 : index
    %14 = vector.load %arg5[%c256, %c0_20] : memref<576x384xbf16, #tpu.memory_space<vmem>>, vector<64x384xbf16>
    tpu.vector_store %arg5[%c256, %c0_20], %13 {strides = array<i32>} : memref<576x384xbf16, #tpu.memory_space<vmem>>, vector<64x384xbf16>,
    %c0_21 = arith.constant 0 : index
    %c0_22 = arith.constant 0 : index
    %c0_23 = arith.constant 0 : index
    %c26 = arith.constant 26 : index
    %15 = vector.load %arg2[%c0_21, %c0_22, %c0_23, %c26] : memref<1x1x64x512xbf16, #tpu.memory_space<vmem>>, vector<1x1x64x384xbf16>
    %16 = vector.shape_cast %15 : vector<1x1x64x384xbf16> to vector<64x384xbf16>
    %c320 = arith.constant 320 : index
    %c0_24 = arith.constant 0 : index
    %17 = vector.load %arg5[%c320, %c0_24] : memref<576x384xbf16, #tpu.memory_space<vmem>>, vector<64x384xbf16>
    tpu.vector_store %arg5[%c320, %c0_24], %16 {strides = array<i32>} : memref<576x384xbf16, #tpu.memory_space<vmem>>, vector<64x384xbf16>,
    %c0_25 = arith.constant 0 : index
    %c0_26 = arith.constant 0 : index
    %c0_27 = arith.constant 0 : index
    %c48 = arith.constant 48 : index
    %18 = vector.load %arg2[%c0_25, %c0_26, %c0_27, %c48] : memref<1x1x64x512xbf16, #tpu.memory_space<vmem>>, vector<1x1x64x384xbf16>
    %19 = vector.shape_cast %18 : vector<1x1x64x384xbf16> to vector<64x384xbf16>
    %c384 = arith.constant 384 : index
    %c0_28 = arith.constant 0 : index
    %20 = vector.load %arg5[%c384, %c0_28] : memref<576x384xbf16, #tpu.memory_space<vmem>>, vector<64x384xbf16>
    tpu.vector_store %arg5[%c384, %c0_28], %19 {strides = array<i32>} : memref<576x384xbf16, #tpu.memory_space<vmem>>, vector<64x384xbf16>,
    %c0_29 = arith.constant 0 : index
    %c0_30 = arith.constant 0 : index
    %c0_31 = arith.constant 0 : index
    %c49 = arith.constant 49 : index
    %21 = vector.load %arg2[%c0_29, %c0_30, %c0_31, %c49] : memref<1x1x64x512xbf16, #tpu.memory_space<vmem>>, vector<1x1x64x384xbf16>
    %22 = vector.shape_cast %21 : vector<1x1x64x384xbf16> to vector<64x384xbf16>
    %c448 = arith.constant 448 : index
    %c0_32 = arith.constant 0 : index
    %23 = vector.load %arg5[%c448, %c0_32] : memref<576x384xbf16, #tpu.memory_space<vmem>>, vector<64x384xbf16>
    tpu.vector_store %arg5[%c448, %c0_32], %22 {strides = array<i32>} : memref<576x384xbf16, #tpu.memory_space<vmem>>, vector<64x384xbf16>,
    %c0_33 = arith.constant 0 : index
    %c0_34 = arith.constant 0 : index
    %c0_35 = arith.constant 0 : index
    %c50 = arith.constant 50 : index
    %24 = vector.load %arg2[%c0_33, %c0_34, %c0_35, %c50] : memref<1x1x64x512xbf16, #tpu.memory_space<vmem>>, vector<1x1x64x384xbf16>
    %25 = vector.shape_cast %24 : vector<1x1x64x384xbf16> to vector<64x384xbf16>
    %c512 = arith.constant 512 : index
    %c0_36 = arith.constant 0 : index
    %26 = vector.load %arg5[%c512, %c0_36] : memref<576x384xbf16, #tpu.memory_space<vmem>>, vector<64x384xbf16>
    tpu.vector_store %arg5[%c512, %c0_36], %25 {strides = array<i32>} : memref<576x384xbf16, #tpu.memory_space<vmem>>, vector<64x384xbf16>,
    %c0_37 = arith.constant 0 : index
    %c0_38 = arith.constant 0 : index
    %27 = vector.load %arg3[%c0_37, %c0_38] : memref<64x576xbf16, #tpu.memory_space<vmem>>, vector<64x576xbf16>
    %c0_39 = arith.constant 0 : index
    %c0_40 = arith.constant 0 : index
    %28 = vector.load %arg5[%c0_39, %c0_40] : memref<576x384xbf16, #tpu.memory_space<vmem>>, vector<576x384xbf16>
    %cst = arith.constant dense<0.000000e+00> : vector<64x384xf32>
    %29 = tpu.matmul %27, %28, %cst {dimension_numbers = #tpu.dot_dimension_numbers<[1], [0], [0], [1], [0, 0, 1, 1], [], []>} : vector<64x576xbf16>, vector<576x384xbf16>, vector<64x384xf32> -> vector<64x384xf32>
    %cst_41 = arith.constant 0.000000e+00 : f32
    %30 = vector.broadcast %cst_41 : f32 to vector<64x384xf32>
    %31 = arith.maximumf %29, %30 : vector<64x384xf32>
    %c0_42 = arith.constant 0 : index
    %c0_43 = arith.constant 0 : index
    %c0_44 = arith.constant 0 : index
    %32 = vector.load %arg4[%c0_42, %c0_43, %c0_44] : memref<1x64x384xf32, #tpu.memory_space<vmem>>, vector<1x64x384xf32>
    %33 = vector.shape_cast %32 : vector<1x64x384xf32> to vector<64x384xf32>
    %34 = vector.shape_cast %31 : vector<64x384xf32> to vector<1x64x384xf32>
    tpu.vector_store %arg4[%c0_42, %c0_43, %c0_44], %34 {strides = array<i32>} : memref<1x64x384xf32, #tpu.memory_space<vmem>>, vector<1x64x384xf32>,
    return
  }
  func.func @transform_0(%arg0: i32, %arg1: i32) -> (i32, i32, i32, i32) {
    %c0_i32 = arith.constant 0 : i32
    %c0_i32_0 = arith.constant 0 : i32
    %c0_i32_1 = arith.constant 0 : i32
    return %arg0, %arg1, %c0_i32, %c0_i32_0 : i32, i32, i32, i32
  }
  func.func @transform_1(%arg0: i32, %arg1: i32) -> (i32, i32) {
    %c0_i32 = arith.constant 0 : i32
    %c0_i32_0 = arith.constant 0 : i32
    %c0_i32_1 = arith.constant 0 : i32
    return %c0_i32, %c0_i32_0 : i32, i32
  }
  func.func @transform_2(%arg0: i32, %arg1: i32) -> (i32, i32, i32) {
    %c0_i32 = arith.constant 0 : i32
    %c0_i32_0 = arith.constant 0 : i32
    return %arg0, %c0_i32, %arg1 : i32, i32, i32
  }
}

</mosaic_0001>

<bundles_post_ra>
// kernel: conv_relu_block.1
= control target key start
LH: loop header
LB: loop body
LE: loop exit
PB: predicated region body
PF: predicated region fallthrough
CT: control target
= control target key end

     0   :  { %s2728_s9 = smov 0   ;;  %s2730_s10 = smov 0   ;;  %s3481_s0 = inlined_call_operand.vmem [shape: bf16[2,1,64,512], index: 0, kind: input, shape index: {}]   ;;  %s3482_s1 = inlined_call_operand.vmem [shape: bf16[64,576], index: 1, kind: input, shape index: {}]   ;;  %s3483_s2 = inlined_call_operand.vmem [shape: f32[2,64,384], index: 2, kind: output, shape index: {}]  }
   0x1   :  { %s2732_s11 = smov 0  }
   0x2 LB: > { %s24_s12 = sadd.s32 1, %s2698_s10  ;;  %p2267_p0 = scmp.ge.s32.totalorder %s2702_s11, 1  ;;  %s2702_s11 = sphi %s2732_s11, %s12_s11   ;;  %s2698_s10 = sphi %s2730_s10, %s3485_s10   ;;  %s2694_s9 = sphi %s2728_s9, %s3484_s9  }
   0x3   : > { %p26_p1 = scmp.ge.s32.totalorder %s24_s12, 2  ;;  %p132_p2 = scmp.lt.s32.totalorder %s2702_s11, 3 }
   0x5   : > { %s3487_s12 = smov (%p26_p1, %s24_s12), 0  ;;  %p133_p3 = pnand %p2267_p0, %p132_p2 }
   0x6   : > { %p162_p4 = scmp.lt.s32.totalorder (!%p133_p3), %s2694_s9, 1  ;;  %s2704_s17 = smov (!%p133_p3), 127   ;;  %v2707_v14 = vmov (!%p133_p3), 0   ;;  %v2914_v19 = vld [vmem:[%s3482_s1 + $0x4] ss:$20 sps:$4 sm:$0xff] (!%p133_p3)   ;;  %vm386_vm0 = vcmask (!%p133_p3), 1039360  }
   0x7   : > { %136 = sbr.rel (%p133_p3) target bundleno = 626 (0x272), region = 28  ;;  %s2705_s18 = smov (!%p133_p3), 126   ;;  %1889 = vmatprep.mubr.bf16.mxu1 (!%p133_p3), %v2707_v14  ;;  %1743 = vmatprep.mubr.bf16.mxu0 (!%p133_p3), %v2914_v19  ;;  %vm535_vm1 = vcmask (!%p133_p3), 1031168   ;;  %vm1429_vm2 = vcmask (!%p133_p3), 637952   ;;  %vm1698_vm3 = vcmask (!%p133_p3), 523264   ;;  %vm684_vm4 = vcmask (!%p133_p3), 850944  }
   0x8   : > { %s2706_s19 = smov (!%p133_p3), 78   ;;  %s2708_s20 = smov (!%p133_p3), 104   ;;  %vm833_vm5 = vcmask (!%p133_p3), 842752   ;;  %vm982_vm6 = vcmask (!%p133_p3), 834560   ;;  %vm1131_vm7 = vcmask (!%p133_p3), 654336   ;;  %vm1280_vm8 = vcmask (!%p133_p3), 646144  }
   0x9   : > { %s2709_s23 = smov (!%p133_p3), 103   ;;  %s2710_s24 = smov (!%p133_p3), 102  }
   0xa   : > { %s2711_s25 = smov (!%p133_p3), 80   ;;  %s2712_s28 = smov (!%p133_p3), 79  }
   0xe   : > { %s3489_s9 = smov (!%p162_p4, %s2694_s9), 1 }
   0xf   : > { %s2441_s13 = sshll.u32 %s3489_s9, 7 }
  0x10   : > { %s2752_s16 = scalar_lea.vmem %s3481_s0, %s2441_s13 }
  0x11   : > { %v2755_v0 = vld [vmem:[%s2752_s16 + $0x4] ss:$16 sps:$4 sm:$0xff]   ;;  %v2758_v1 = vld [vmem:[%s2752_s16] ss:$16 sps:$4 sm:$0xff]   ;;  %v2763_v2 = vld [vmem:[%s2752_s16 + $0x8] ss:$16 sps:$4 sm:$0xff]  }
  0x12   : > { %356 = vrot.lane.b32.xlu0 %v2755_v0, %s2704_s17  ;;  %1711 = vmatprep.subr.bf16.mxu0 %v2755_v0  ;;  %v2769_v3 = vld [vmem:[%s2752_s16 + $0x24] ss:$16 sps:$4 sm:$0xff]   ;;  %v2773_v4 = vld [vmem:[%s2752_s16 + $0x20] ss:$16 sps:$4 sm:$0xff]   ;;  %v2779_v5 = vld [vmem:[%s2752_s16 + $0x28] ss:$16 sps:$4 sm:$0xff]  }
  0x13   : > { %354 = vrot.lane.b32.xlu1 %v2758_v1, %s2704_s17  ;;  %1712 = vmatpush1.bf16.msra.mxu0 %v2758_v1  ;;  %v2782_v6 = vld [vmem:[%s2752_s16 + $0x44] ss:$16 sps:$4 sm:$0xff]   ;;  %v2791_v9 = vld [vmem:[%s2752_s16 + $0x48] ss:$16 sps:$4 sm:$0xff]   ;;  %v2794_v10 = vld [vmem:[%s2752_s16 + $0x40] ss:$16 sps:$4 sm:$0xff]  }
  0x14   : > { %1713 = vmatprep.subr.bf16.mxu0 %v2769_v3  ;;  %v286_v7 = vld [vmem:[%s2752_s16 + $0x60] sm:$0xff]  ;;  %v288_v8 = vld [vmem:[%s2752_s16 + $0x70] sm:$0xff]  ;;  %v2814_v13 = vld [vmem:[%s2752_s16 + $0x68] ss:$16 sps:$4 sm:$0xff]  }
  0x15   : > { %v2798_v11 = vcombine.high %v286_v7, %v288_v8  ;;  %v2804_v12 = vcombine.low %v286_v7, %v288_v8  ;;  %v2868_v15 = vld [vmem:[%s2752_s16 + $0xc] ss:$16 sps:$4 sm:$0xff]  }
  0x16   : > { %358 = vrot.lane.b32.xlu0 %v2763_v2, %s2704_s17  ;;  %v2879_v16 = vld [vmem:[%s2752_s16 + $0x2c] ss:$16 sps:$4 sm:$0xff]  }
  0x17   : > { %364 = vrot.lane.b32.xlu1 %v2769_v3, %s2704_s17  ;;  %1714 = vmatpush1.bf16.msra.mxu0 %v2773_v4  ;;  %v2890_v17 = vld [vmem:[%s2752_s16 + $0x4c] ss:$16 sps:$4 sm:$0xff]  }
  0x18   : > { %1715 = vmatprep.subr.bf16.mxu0 %v2782_v6  ;;  %v2901_v18 = vld [vmem:[%s2752_s16 + $0x6c] ss:$16 sps:$4 sm:$0xff]  }
  0x1a   : > { %366 = vrot.lane.b32.xlu0 %v2779_v5, %s2704_s17 }
  0x1b   : > { %362 = vrot.lane.b32.xlu1 %v2773_v4, %s2704_s17  ;;  %1716 = vmatpush1.bf16.msra.mxu0 %v2794_v10 }
  0x1c   : > { %1717 = vmatprep.subr.bf16.mxu0 %v2798_v11 }
  0x1e   : > { %372 = vrot.lane.b32.xlu0 %v2782_v6, %s2704_s17 }
  0x1f   : > { %374 = vrot.lane.b32.xlu1 %v2791_v9, %s2704_s17  ;;  %1718 = vmatpush1.bf16.msra.mxu0 %v2804_v12 }
  0x22   : > { %370 = vrot.lane.b32.xlu0 %v2794_v10, %s2704_s17 }
  0x23   : > { %380 = vrot.lane.b32.xlu1 %v2798_v11, %s2704_s17 }
  0x26   : > { %382 = vrot.lane.b32.xlu0 %v2814_v13, %s2704_s17 }
  0x27   : > { %378 = vrot.lane.b32.xlu1 %v2804_v12, %s2704_s17 }
  0x2a   : > { %505 = vrot.lane.b32.xlu0 %v2755_v0, %s2705_s18 }
  0x2b   : > { %507 = vrot.lane.b32.xlu1 %v2763_v2, %s2705_s18 }
  0x2e   : > { %1399 = vrot.lane.b32.xlu0 %v2755_v0, %s2706_s19 }
  0x2f   : > { %1401 = vrot.lane.b32.xlu1 %v2763_v2, %s2706_s19 }
  0x32   : > { %503 = vrot.lane.b32.xlu0 %v2758_v1, %s2705_s18 }
  0x33   : > { %1397 = vrot.lane.b32.xlu1 %v2758_v1, %s2706_s19 }
  0x36   : > { %513 = vrot.lane.b32.xlu0 %v2769_v3, %s2705_s18 }
  0x37   : > { %515 = vrot.lane.b32.xlu1 %v2779_v5, %s2705_s18 }
  0x3a   : > { %1407 = vrot.lane.b32.xlu0 %v2769_v3, %s2706_s19 }
  0x3b   : > { %1409 = vrot.lane.b32.xlu1 %v2779_v5, %s2706_s19 }
  0x3e   : > { %511 = vrot.lane.b32.xlu0 %v2773_v4, %s2705_s18 }
  0x3f   : > { %1405 = vrot.lane.b32.xlu1 %v2773_v4, %s2706_s19 }
  0x42   : > { %521 = vrot.lane.b32.xlu0 %v2782_v6, %s2705_s18 }
  0x43   : > { %523 = vrot.lane.b32.xlu1 %v2791_v9, %s2705_s18 }
  0x46   : > { %1415 = vrot.lane.b32.xlu0 %v2782_v6, %s2706_s19 }
  0x47   : > { %1417 = vrot.lane.b32.xlu1 %v2791_v9, %s2706_s19 }
  0x4a   : > { %519 = vrot.lane.b32.xlu0 %v2794_v10, %s2705_s18 }
  0x4b   : > { %1413 = vrot.lane.b32.xlu1 %v2794_v10, %s2706_s19 }
  0x4e   : > { %529 = vrot.lane.b32.xlu0 %v2798_v11, %s2705_s18 }
  0x4f   : > { %531 = vrot.lane.b32.xlu1 %v2814_v13, %s2705_s18 }
  0x52   : > { %1423 = vrot.lane.b32.xlu0 %v2798_v11, %s2706_s19 }
  0x53   : > { %1425 = vrot.lane.b32.xlu1 %v2814_v13, %s2706_s19 }
  0x56   : > { %527 = vrot.lane.b32.xlu0 %v2804_v12, %s2705_s18 }
  0x57   : > { %1421 = vrot.lane.b32.xlu1 %v2804_v12, %s2706_s19 }
  0x5a   : > { %509 = vrot.lane.b32.xlu0 %v2868_v15, %s2705_s18 }
  0x5b   : > { %654 = vrot.lane.b32.xlu1 %v2755_v0, %s2708_s20 }
  0x5e   : > { %656 = vrot.lane.b32.xlu0 %v2763_v2, %s2708_s20 }
  0x5f   : > { %652 = vrot.lane.b32.xlu1 %v2758_v1, %s2708_s20 }
  0x62   : > { %517 = vrot.lane.b32.xlu0 %v2879_v16, %s2705_s18 }
  0x63   : > { %662 = vrot.lane.b32.xlu1 %v2769_v3, %s2708_s20 }
  0x66   : > { %664 = vrot.lane.b32.xlu0 %v2779_v5, %s2708_s20 }
  0x67   : > { %660 = vrot.lane.b32.xlu1 %v2773_v4, %s2708_s20 }
  0x6a   : > { %525 = vrot.lane.b32.xlu0 %v2890_v17, %s2705_s18 }
  0x6b   : > { %670 = vrot.lane.b32.xlu1 %v2782_v6, %s2708_s20 }
  0x6e   : > { %672 = vrot.lane.b32.xlu0 %v2791_v9, %s2708_s20 }
  0x6f   : > { %668 = vrot.lane.b32.xlu1 %v2794_v10, %s2708_s20 }
  0x72   : > { %533 = vrot.lane.b32.xlu0 %v2901_v18, %s2705_s18  ;;  %s2578_s18 = smul.u32 192, %s3489_s9 }
  0x73   : > { %678 = vrot.lane.b32.xlu1 %v2798_v11, %s2708_s20 }
  0x74   : > { %s3422_s22 = scalar_lea.vmem %s3483_s2, %s2578_s18 }
  0x76   : > { %680 = vrot.lane.b32.xlu0 %v2814_v13, %s2708_s20 }
  0x77   : > { %676 = vrot.lane.b32.xlu1 %v2804_v12, %s2708_s20 }
  0x7a   : > { %658 = vrot.lane.b32.xlu0 %v2868_v15, %s2708_s20 }
  0x7b   : > { %803 = vrot.lane.b32.xlu1 %v2755_v0, %s2709_s23 }
  0x7e   : > { %805 = vrot.lane.b32.xlu0 %v2763_v2, %s2709_s23 }
  0x7f   : > { %360 = vrot.lane.b32.xlu1 %v2868_v15, %s2704_s17 }
  0x82   : > { %801 = vrot.lane.b32.xlu0 %v2758_v1, %s2709_s23 }
  0x83   : > { %666 = vrot.lane.b32.xlu1 %v2879_v16, %s2708_s20 }
  0x84   : > { %v357_v20 = vpop.permute.xlu0 %356 }
  0x85   : > { %v355_v21 = vpop.permute.xlu1 %354 }
  0x86   : > { %811 = vrot.lane.b32.xlu0 %v2769_v3, %s2709_s23  ;;  %v387_v25 = vsel %vm386_vm0, %v355_v21, %v357_v20 }
  0x87   : > { %813 = vrot.lane.b32.xlu1 %v2779_v5, %s2709_s23 }
  0x88   : > { %v2937_v22 = vpop.permute.xlu0 %358 }
  0x89   : > { %v365_v23 = vpop.permute.xlu1 %364  ;;  %v388_v24 = vsel %vm386_vm0, %v357_v20, %v2937_v22 }
  0x8a   : > { %368 = vrot.lane.b32.xlu0 %v2879_v16, %s2704_s17  ;;  %1719 = vmatprep.subr.bf16.mxu0 %v388_v24 }
  0x8b   : > { %809 = vrot.lane.b32.xlu1 %v2773_v4, %s2709_s23  ;;  %1720 = vmatpush1.bf16.msra.mxu0 %v387_v25 }
  0x8c   : > { %v2946_v26 = vpop.permute.xlu0 %366 }
  0x8d   : > { %v363_v27 = vpop.permute.xlu1 %362  ;;  %v391_v28 = vsel %vm386_vm0, %v365_v23, %v2946_v26 }
  0x8e   : > { %674 = vrot.lane.b32.xlu0 %v2890_v17, %s2708_s20  ;;  %1721 = vmatprep.subr.bf16.mxu0 %v391_v28  ;;  %v390_v29 = vsel %vm386_vm0, %v363_v27, %v365_v23 }
  0x8f   : > { %819 = vrot.lane.b32.xlu1 %v2782_v6, %s2709_s23  ;;  %1722 = vmatpush1.bf16.msra.mxu0 %v390_v29 }
  0x90   : > { %v373_v30 = vpop.permute.xlu0 %372 }
  0x91   : > { %v2955_v31 = vpop.permute.xlu1 %374 }
  0x92   : > { %821 = vrot.lane.b32.xlu0 %v2791_v9, %s2709_s23  ;;  %v394_v32 = vsel %vm386_vm0, %v373_v30, %v2955_v31 }
  0x93   : > { %376 = vrot.lane.b32.xlu1 %v2890_v17, %s2704_s17  ;;  %1723 = vmatprep.subr.bf16.mxu0 %v394_v32 }
  0x94   : > { %v371_v33 = vpop.permute.xlu0 %370 }
  0x95   : > { %v381_v34 = vpop.permute.xlu1 %380  ;;  %v393_v35 = vsel %vm386_vm0, %v371_v33, %v373_v30 }
  0x96   : > { %817 = vrot.lane.b32.xlu0 %v2794_v10, %s2709_s23  ;;  %1724 = vmatpush1.bf16.msra.mxu0 %v393_v35 }
  0x97   : > { %682 = vrot.lane.b32.xlu1 %v2901_v18, %s2708_s20 }
  0x98   : > { %v2968_v36 = vpop.permute.xlu0 %382 }
  0x99   : > { %v379_v37 = vpop.permute.xlu1 %378  ;;  %v397_v38 = vsel %vm386_vm0, %v381_v34, %v2968_v36 }
  0x9a   : > { %827 = vrot.lane.b32.xlu0 %v2798_v11, %s2709_s23  ;;  %1725 = vmatprep.subr.bf16.mxu0 %v397_v38  ;;  %v396_v39 = vsel %vm386_vm0, %v379_v37, %v381_v34  ;;  %v3068_v38 = vld [vmem:[%s3482_s1 + $0x10] ss:$20 sps:$4 sm:$0xff]  }
  0x9b   : > { %829 = vrot.lane.b32.xlu1 %v2814_v13, %s2709_s23  ;;  %1726 = vmatpush1.bf16.msra.mxu0 %v396_v39 }
  0x9c   : > { %v506_v40 = vpop.permute.xlu0 %505 }
  0x9d   : > { %v2977_v41 = vpop.permute.xlu1 %507 }
  0x9e   : > { %384 = vrot.lane.b32.xlu0 %v2901_v18, %s2704_s17  ;;  %v537_v42 = vsel %vm535_vm1, %v506_v40, %v2977_v41 }
  0x9f   : > { %825 = vrot.lane.b32.xlu1 %v2804_v12, %s2709_s23  ;;  %1727 = vmatprep.subr.bf16.mxu0 %v537_v42 }
  0xa0   : > { %v1400_v43 = vpop.permute.xlu0 %1399 }
  0xa1   : > { %v2985_v44 = vpop.permute.xlu1 %1401 }
  0xa2   : > { %952 = vrot.lane.b32.xlu0 %v2755_v0, %s2710_s24  ;;  %v1431_v45 = vsel %vm1429_vm2, %v1400_v43, %v2985_v44 }
  0xa3   : > { %954 = vrot.lane.b32.xlu1 %v2763_v2, %s2710_s24  ;;  %1857 = vmatprep.subr.bf16.mxu1 %v1431_v45 }
  0xa4   : > { %v504_v46 = vpop.permute.xlu0 %503 }
  0xa5   : > { %v1398_v47 = vpop.permute.xlu1 %1397  ;;  %v536_v48 = vsel %vm535_vm1, %v504_v46, %v506_v40  ;;  %v2636_v40 = vld [vmem:[%s2752_s16 + $0x8] ss:$16 sps:$4 sm:$0xff]  }
  0xa6   : > { %1103 = vrot.lane.b32.xlu0 %v2763_v2, %s2711_s25  ;;  %1728 = vmatpush1.bf16.msra.mxu0 %v536_v48  ;;  %v1430_v49 = vsel %vm1429_vm2, %v1398_v47, %v1400_v43  ;;  %v2637_v48 = vld [vmem:[%s2752_s16 + $0x28] ss:$16 sps:$4 sm:$0xff]  }
  0xa7   : > { %1105 = vrot.lane.b32.xlu1 %v2868_v15, %s2711_s25  ;;  %1858 = vmatpush1.bf16.msra.mxu1 %v1430_v49 }
  0xa8   : > { %v514_v50 = vpop.permute.xlu0 %513 }
  0xa9   : > { %v2999_v51 = vpop.permute.xlu1 %515 }
  0xaa   : > { %807 = vrot.lane.b32.xlu0 %v2868_v15, %s2709_s23  ;;  %v540_v52 = vsel %vm535_vm1, %v514_v50, %v2999_v51 }
  0xab   : > { %950 = vrot.lane.b32.xlu1 %v2758_v1, %s2710_s24  ;;  %1729 = vmatprep.subr.bf16.mxu0 %v540_v52 }
  0xac   : > { %v1408_v53 = vpop.permute.xlu0 %1407 }
  0xad   : > { %v3007_v54 = vpop.permute.xlu1 %1409 }
  0xae   : > { %960 = vrot.lane.b32.xlu0 %v2769_v3, %s2710_s24  ;;  %v1434_v55 = vsel %vm1429_vm2, %v1408_v53, %v3007_v54 }
  0xaf   : > { %962 = vrot.lane.b32.xlu1 %v2779_v5, %s2710_s24  ;;  %1859 = vmatprep.subr.bf16.mxu1 %v1434_v55 }
  0xb0   : > { %v512_v56 = vpop.permute.xlu0 %511 }
  0xb1   : > { %v1406_v57 = vpop.permute.xlu1 %1405  ;;  %v539_v58 = vsel %vm535_vm1, %v512_v56, %v514_v50  ;;  %v3093_v50 = vld [vmem:[%s3482_s1 + $0x38] ss:$20 sps:$4 sm:$0xff]  }
  0xb2   : > { %1111 = vrot.lane.b32.xlu0 %v2779_v5, %s2711_s25  ;;  %1730 = vmatpush1.bf16.msra.mxu0 %v539_v58  ;;  %v1433_v59 = vsel %vm1429_vm2, %v1406_v57, %v1408_v53  ;;  %v2638_v56 = vld [vmem:[%s2752_s16 + $0x48] ss:$16 sps:$4 sm:$0xff]   ;;  %v3117_v58 = vld [vmem:[%s3482_s1 + $0x60] ss:$20 sps:$4 sm:$0xff]  }
  0xb3   : > { %1113 = vrot.lane.b32.xlu1 %v2879_v16, %s2711_s25  ;;  %1860 = vmatpush1.bf16.msra.mxu1 %v1433_v59 }
  0xb4   : > { %v522_v60 = vpop.permute.xlu0 %521 }
  0xb5   : > { %v3021_v61 = vpop.permute.xlu1 %523 }
  0xb6   : > { %815 = vrot.lane.b32.xlu0 %v2879_v16, %s2709_s23  ;;  %v543_v62 = vsel %vm535_vm1, %v522_v60, %v3021_v61 }
  0xb7   : > { %958 = vrot.lane.b32.xlu1 %v2773_v4, %s2710_s24  ;;  %1731 = vmatprep.subr.bf16.mxu0 %v543_v62 }
  0xb8   : > { %v1416_v63 = vpop.permute.xlu0 %1415 }
  0xb9   : > { %v3029_v7 = vpop.permute.xlu1 %1417 }
  0xba   : > { %968 = vrot.lane.b32.xlu0 %v2782_v6, %s2710_s24  ;;  %v1437_v8 = vsel %vm1429_vm2, %v1416_v63, %v3029_v7 }
  0xbb   : > { %970 = vrot.lane.b32.xlu1 %v2791_v9, %s2710_s24  ;;  %1861 = vmatprep.subr.bf16.mxu1 %v1437_v8  ;;  %v3141_v8 = vld [vmem:[%s3482_s1 + $0x88] ss:$20 sps:$4 sm:$0xff]  }
  0xbc   : > { %v520_v20 = vpop.permute.xlu0 %519 }
  0xbd   : > { %v1414_v21 = vpop.permute.xlu1 %1413  ;;  %v542_v23 = vsel %vm535_vm1, %v520_v20, %v522_v60 }
  0xbe   : > { %1119 = vrot.lane.b32.xlu0 %v2791_v9, %s2711_s25  ;;  %1732 = vmatpush1.bf16.msra.mxu0 %v542_v23  ;;  %v1436_v24 = vsel %vm1429_vm2, %v1414_v21, %v1416_v63 }
  0xbf   : > { %1121 = vrot.lane.b32.xlu1 %v2890_v17, %s2711_s25  ;;  %1862 = vmatpush1.bf16.msra.mxu1 %v1436_v24 }
  0xc0   : > { %v530_v25 = vpop.permute.xlu0 %529 }
  0xc1   : > { %v3043_v27 = vpop.permute.xlu1 %531 }
  0xc2   : > { %823 = vrot.lane.b32.xlu0 %v2890_v17, %s2709_s23  ;;  %v546_v28 = vsel %vm535_vm1, %v530_v25, %v3043_v27 }
  0xc3   : > { %966 = vrot.lane.b32.xlu1 %v2794_v10, %s2710_s24  ;;  %1733 = vmatprep.subr.bf16.mxu0 %v546_v28 }
  0xc4   : > { %v1424_v29 = vpop.permute.xlu0 %1423 }
  0xc5   : > { %v3051_v30 = vpop.permute.xlu1 %1425 }
  0xc6   : > { %976 = vrot.lane.b32.xlu0 %v2798_v11, %s2710_s24  ;;  %v1440_v32 = vsel %vm1429_vm2, %v1424_v29, %v3051_v30 }
  0xc7   : > { %978 = vrot.lane.b32.xlu1 %v2814_v13, %s2710_s24  ;;  %1863 = vmatprep.subr.bf16.mxu1 %v1440_v32 }
  0xc8   : > { %v528_v33 = vpop.permute.xlu0 %527 }
  0xc9   : > { %v1422_v34 = vpop.permute.xlu1 %1421  ;;  %v545_v35 = vsel %vm535_vm1, %v528_v33, %v530_v25 }
  0xca   : > { %1127 = vrot.lane.b32.xlu0 %v2814_v13, %s2711_s25  ;;  %1734 = vmatpush1.bf16.msra.mxu0 %v545_v35  ;;  %v1439_v37 = vsel %vm1429_vm2, %v1422_v34, %v1424_v29  ;;  %v2644_v35 = vld [vmem:[%s2752_s16 + $0x4] ss:$16 sps:$4 sm:$0xff]  }
  0xcb   : > { %1129 = vrot.lane.b32.xlu1 %v2901_v18, %s2711_s25  ;;  %1864 = vmatpush1.bf16.msra.mxu1 %v1439_v37  ;;  %v2646_v37 = vld [vmem:[%s2752_s16] ss:$16 sps:$4 sm:$0xff]  }
  0xcc   : > { %v510_v39 = vpop.permute.xlu0 %509 }
  0xcd   : > { %v655_v42 = vpop.permute.xlu1 %654  ;;  %v538_v43 = vsel %vm535_vm1, %v2977_v41, %v510_v39  ;;  %v3206_v39 = vld [vmem:[%s3482_s1 + $0x54] ss:$20 sps:$4 sm:$0xff]  }
  0xce   : > { %831 = vrot.lane.b32.xlu0 %v2901_v18, %s2709_s23  ;;  %2442 = vmatprep.subr.bf16.mxu1 %v538_v43  ;;  %v2647_v43 = vld [vmem:[%s2752_s16 + $0x24] ss:$16 sps:$4 sm:$0xff]  }
  0xcf   : > { %974 = vrot.lane.b32.xlu1 %v2804_v12, %s2710_s24  ;;  %2431 = vmatmul.mubr.msk.bf16.vlgmr.msra.gmra.mrb[0].mxu1 %vm1698_vm3, %v3068_v38 }
  0xd0   : > { %v3079_v45 = vpop.permute.xlu0 %656  ;;  %2443 = vmatpush3.bf16.msra.mxu1 %v2636_v40  ;;  %1899 = vmatprep.mubr.bf16.mxu1 %v2707_v14 }
  0xd1   : > { %v653_v46 = vpop.permute.xlu1 %652  ;;  %v686_v41 = vsel %vm684_vm4, %v655_v42, %v3079_v45 }
  0xd2   : > { %1101 = vrot.lane.b32.xlu0 %v2755_v0, %s2711_s25  ;;  %1735 = vmatprep.subr.bf16.mxu0 %v686_v41  ;;  %v685_v47 = vsel %vm684_vm4, %v653_v46, %v655_v42 }
  0xd3   : > { %1252 = vrot.lane.b32.xlu1 %v2763_v2, %s2712_s28  ;;  %1736 = vmatpush1.bf16.msra.mxu0 %v685_v47 }
  0xd4   : > { %v518_v49 = vpop.permute.xlu0 %517 }
  0xd5   : > { %v663_v52 = vpop.permute.xlu1 %662  ;;  %v541_v0 = vsel %vm535_vm1, %v2999_v51, %v518_v49  ;;  %v2650_v49 = vld [vmem:[%s2752_s16 + $0x44] ss:$16 sps:$4 sm:$0xff]  }
  0xd6   : > { %1254 = vrot.lane.b32.xlu0 %v2868_v15, %s2712_s28  ;;  %2444 = vmatprep.subr.bf16.mxu1 %v541_v0  ;;  %v2652_v0 = vld [vmem:[%s2752_s16 + $0x40] ss:$16 sps:$4 sm:$0xff]  }
  0xd7   : > { %956 = vrot.lane.b32.xlu1 %v2868_v15, %s2710_s24  ;;  %2445 = vmatpush3.bf16.msra.mxu1 %v2637_v48 }
  0xd8   : > { %v3101_v2 = vpop.permute.xlu0 %664  ;;  %2432 = vmatmul.mubr.msk.bf16.gmra.mrb[4].mxu1 %vm1698_vm3, %v3093_v50 }
  0xd9   : > { %v661_v53 = vpop.permute.xlu1 %660  ;;  %v689_v55 = vsel %vm684_vm4, %v663_v52, %v3101_v2  ;;  %1909 = vmatprep.mubr.bf16.mxu1 %v2707_v14 }
  0xda   : > { %1099 = vrot.lane.b32.xlu0 %v2758_v1, %s2711_s25  ;;  %1737 = vmatprep.subr.bf16.mxu0 %v689_v55  ;;  %v688_v51 = vsel %vm684_vm4, %v661_v53, %v663_v52  ;;  %v3226_v52 = vld [vmem:[%s3482_s1 + $0x50] ss:$20 sps:$4 sm:$0xff]  }
  0xdb   : > { %1109 = vrot.lane.b32.xlu1 %v2769_v3, %s2711_s25  ;;  %1738 = vmatpush1.bf16.msra.mxu0 %v688_v51  ;;  %v2653_v51 = vld [vmem:[%s2752_s16 + $0x64] ss:$16 sps:$4 sm:$0xff]  }
  0xdc   : > { %v526_v57 = vpop.permute.xlu0 %525 }
  0xdd   : > { %v671_v59 = vpop.permute.xlu1 %670  ;;  %v544_v60 = vsel %vm535_vm1, %v3021_v61, %v526_v57  ;;  %v2639_v61 = vld [vmem:[%s2752_s16 + $0x68] ss:$16 sps:$4 sm:$0xff]  }
  0xde   : > { %1260 = vrot.lane.b32.xlu0 %v2779_v5, %s2712_s28  ;;  %2446 = vmatprep.subr.bf16.mxu1 %v544_v60 }
  0xdf   : > { %1262 = vrot.lane.b32.xlu1 %v2879_v16, %s2712_s28  ;;  %2447 = vmatpush3.bf16.msra.mxu1 %v2638_v56  ;;  %v2655_v56 = vld [vmem:[%s2752_s16 + $0x60] ss:$16 sps:$4 sm:$0xff]  }
  0xe0   : > { %v3125_v1 = vpop.permute.xlu0 %672  ;;  %2433 = vmatmul.mubr.msk.bf16.gmra.mrb[8].mxu1 %vm1698_vm3, %v3117_v58 }
  0xe1   : > { %v669_v3 = vpop.permute.xlu1 %668  ;;  %v692_v62 = vsel %vm684_vm4, %v671_v59, %v3125_v1  ;;  %1919 = vmatprep.mubr.bf16.mxu1 %v2707_v14 }
  0xe2   : > { %964 = vrot.lane.b32.xlu0 %v2879_v16, %s2710_s24  ;;  %1739 = vmatprep.subr.bf16.mxu0 %v692_v62  ;;  %v691_v5 = vsel %vm684_vm4, %v669_v3, %v671_v59  ;;  %v3259_v62 = vld [vmem:[%s3482_s1 + $0xc] ss:$20 sps:$4 sm:$0xff]  }
  0xe3   : > { %1107 = vrot.lane.b32.xlu1 %v2773_v4, %s2711_s25  ;;  %1740 = vmatpush1.bf16.msra.mxu0 %v691_v5 }
  0xe4   : > { %v534_v63 = vpop.permute.xlu0 %533 }
  0xe5   : > { %v679_v20 = vpop.permute.xlu1 %678  ;;  %v547_v14 = vsel %vm535_vm1, %v3043_v27, %v534_v63  ;;  %v3173_v27 = vld [vmem:[%s3482_s1 + $0x2c] ss:$20 sps:$4 sm:$0xff]  }
  0xe6   : > { %1117 = vrot.lane.b32.xlu0 %v2782_v6, %s2711_s25  ;;  %2448 = vmatprep.subr.bf16.mxu1 %v547_v14 }
  0xe7   : > { %1268 = vrot.lane.b32.xlu1 %v2791_v9, %s2712_s28  ;;  %2449 = vmatpush3.bf16.msra.mxu1 %v2639_v61  ;;  %v3164_v9 = vld [vmem:[%s3482_s1] ss:$20 sps:$4 sm:$0xff]  }
  0xe8   : > { %v3149_v4 = vpop.permute.xlu0 %680  ;;  %2434 = vmatmul.mubr.msk.bf16.gmra.mrb[12].mxu1 %vm1698_vm3, %v3141_v8 }
  0xe9   : > { %v677_v21 = vpop.permute.xlu1 %676  ;;  %v695_v23 = vsel %vm684_vm4, %v679_v20, %v3149_v4  ;;  %1962 = vmatprep.mubr.bf16.mxu1 %v2914_v19 }
  0xea   : > { %1270 = vrot.lane.b32.xlu0 %v2890_v17, %s2712_s28  ;;  %1741 = vmatprep.subr.bf16.mxu0 %v695_v23  ;;  %v694_v6 = vsel %vm684_vm4, %v677_v21, %v679_v20 }
  0xeb   : > { %972 = vrot.lane.b32.xlu1 %v2890_v17, %s2710_s24  ;;  %1742 = vmatpush1.bf16.msra.mxu0 %v694_v6 }
  0xec   : > { %v659_v24 = vpop.permute.xlu0 %658 }
  0xed   : > { %v804_v25 = vpop.permute.xlu1 %803  ;;  %v687_v19 = vsel %vm684_vm4, %v3079_v45, %v659_v24  ;;  %v2649_v45 = vld [vmem:[%s2752_s16 + $0x20] ss:$16 sps:$4 sm:$0xff]  }
  0xee   : > { %1115 = vrot.lane.b32.xlu0 %v2794_v10, %s2711_s25  ;;  %2450 = vmatprep.subr.bf16.mxu1 %v687_v19 }
  0xef   : > { %1125 = vrot.lane.b32.xlu1 %v2798_v11, %s2711_s25  ;;  %1744 = vmatmul.mubr.bf16.vlgmr.msra.gmra.mrb[0].mxu0 %v3164_v9 }
  0xf0   : > { %v3178_v28 = vpop.permute.xlu0 %805  ;;  %1753 = vmatprep.mubr.bf16.mxu0 %v3173_v27 }
  0xf1   : > { %v361_v29 = vpop.permute.xlu1 %360  ;;  %v835_v10 = vsel %vm833_vm5, %v804_v25, %v3178_v28 }
  0xf2   : > { %v389_v32 = vsel %vm386_vm0, %v2937_v22, %v361_v29  ;;  %1276 = vrot.lane.b32.xlu0 %v2814_v13, %s2712_s28  ;;  %1784 = vmatprep.subr.bf16.mxu0 %v835_v10  ;;  %v3198_v13 = vld [vmem:[%s3482_s1 + $0x28] ss:$20 sps:$4 sm:$0xff]  }
  0xf3   : > { %1278 = vrot.lane.b32.xlu1 %v2901_v18, %s2712_s28  ;;  %2451 = vmatpush3.bf16.msra.mxu1 %v389_v32 }
  0xf4   : > { %v802_v11 = vpop.permute.xlu0 %801 }
  0xf5   : > { %v834_v33 = vsel %vm833_vm5, %v802_v11, %v804_v25  ;;  %v667_v34 = vpop.permute.xlu1 %666 }
  0xf6   : > { %980 = vrot.lane.b32.xlu0 %v2901_v18, %s2710_s24  ;;  %1785 = vmatpush1.bf16.msra.mxu0 %v834_v33  ;;  %v690_v22 = vsel %vm684_vm4, %v3101_v2, %v667_v34 }
  0xf7   : > { %1123 = vrot.lane.b32.xlu1 %v2804_v12, %s2711_s25  ;;  %2452 = vmatprep.subr.bf16.mxu1 %v690_v22 }
  0xf8   : > { %v812_v40 = vpop.permute.xlu0 %811  ;;  %1754 = vmatmul.mubr.bf16.gmra.mrb[4].mxu0 %v3198_v13 }
  0xf9   : > { %v3209_v42 = vpop.permute.xlu1 %813  ;;  %1763 = vmatprep.mubr.bf16.mxu0 %v3206_v39 }
  0xfa   : > { %1250 = vrot.lane.b32.xlu0 %v2644_v35, %s2712_s28  ;;  %v838_v12 = vsel %vm833_vm5, %v812_v40, %v3209_v42 }
  0xfb   : > { %1248 = vrot.lane.b32.xlu1 %v2646_v37, %s2712_s28  ;;  %1786 = vmatprep.subr.bf16.mxu0 %v838_v12 }
  0xfc   : > { %v369_v46 = vpop.permute.xlu0 %368 }
  0xfd   : > { %v392_v41 = vsel %vm386_vm0, %v2946_v26, %v369_v46  ;;  %v810_v47 = vpop.permute.xlu1 %809  ;;  %v3233_v26 = vld [vmem:[%s3482_s1 + $0x7c] ss:$20 sps:$4 sm:$0xff]  }
  0xfe   : > { %v837_v48 = vsel %vm833_vm5, %v810_v47, %v812_v40  ;;  %1258 = vrot.lane.b32.xlu0 %v2647_v43, %s2712_s28  ;;  %2453 = vmatpush3.bf16.msra.mxu1 %v392_v41 }
  0xff   : > { %1256 = vrot.lane.b32.xlu1 %v2649_v45, %s2712_s28  ;;  %1787 = vmatpush1.bf16.msra.mxu0 %v837_v48 }
 0x100   : > { %v675_v2 = vpop.permute.xlu0 %674  ;;  %1764 = vmatmul.mubr.bf16.gmra.mrb[8].mxu0 %v3226_v52 }
 0x101   : > { %v820_v53 = vpop.permute.xlu1 %819  ;;  %v693_v55 = vsel %vm684_vm4, %v3125_v1, %v675_v2  ;;  %1773 = vmatprep.mubr.bf16.mxu0 %v3233_v26  ;;  %v3253_v1 = vld [vmem:[%s3482_s1 + $0x78] ss:$20 sps:$4 sm:$0xff]  }
 0x102   : > { %1266 = vrot.lane.b32.xlu0 %v2650_v49, %s2712_s28  ;;  %2454 = vmatprep.subr.bf16.mxu1 %v693_v55 }
 0x103   : > { %1264 = vrot.lane.b32.xlu1 %v2652_v0, %s2712_s28 }
 0x104   : > { %v3243_v57 = vpop.permute.xlu0 %821 }
 0x105   : > { %v377_v59 = vpop.permute.xlu1 %376  ;;  %v841_v60 = vsel %vm833_vm5, %v820_v53, %v3243_v57 }
 0x106   : > { %v395_v3 = vsel %vm386_vm0, %v2955_v31, %v377_v59  ;;  %1274 = vrot.lane.b32.xlu0 %v2653_v51, %s2712_s28  ;;  %1788 = vmatprep.subr.bf16.mxu0 %v841_v60 }
 0x107   : > { %1272 = vrot.lane.b32.xlu1 %v2655_v56, %s2712_s28  ;;  %2455 = vmatpush3.bf16.msra.mxu1 %v395_v3 }
 0x108   : > { %v818_v5 = vpop.permute.xlu0 %817  ;;  %1774 = vmatmul.mubr.bf16.gmra.mrb[12].mxu0 %v3253_v1 }
 0x109   : > { %v840_v31 = vsel %vm833_vm5, %v818_v5, %v820_v53  ;;  %v683_v61 = vpop.permute.xlu1 %682  ;;  %1816 = vmatprep.mubr.bf16.mxu0 %v3259_v62 }
 0x10a   : > { %1403 = vrot.lane.b32.xlu0 %v2868_v15, %s2706_s19  ;;  %1789 = vmatpush1.bf16.msra.mxu0 %v840_v31  ;;  %v696_v63 = vsel %vm684_vm4, %v3149_v4, %v683_v61 }
 0x10b   : > { %1411 = vrot.lane.b32.xlu1 %v2879_v16, %s2706_s19  ;;  %2456 = vmatprep.subr.bf16.mxu1 %v696_v63 }
 0x10c   : > { %v828_v20 = vpop.permute.xlu0 %827 }
 0x10d   : > { %v3270_v14 = vpop.permute.xlu1 %829 }
 0x10e   : > { %1419 = vrot.lane.b32.xlu0 %v2890_v17, %s2706_s19  ;;  %v844_v21 = vsel %vm833_vm5, %v828_v20, %v3270_v14 }
 0x10f   : > { %1427 = vrot.lane.b32.xlu1 %v2901_v18, %s2706_s19  ;;  %1790 = vmatprep.subr.bf16.mxu0 %v844_v21 }
 0x110   : > { %v385_v15 = vpop.permute.xlu0 %384 }
 0x111   : > { %v398_v4 = vsel %vm386_vm0, %v2968_v36, %v385_v15  ;;  %v826_v23 = vpop.permute.xlu1 %825 }
 0x112   : > { %v843_v16 = vsel %vm833_vm5, %v826_v23, %v828_v20  ;;  %2457 = vmatpush3.bf16.msra.mxu1 %v398_v4 }
 0x113   : > { %1791 = vmatpush1.bf16.msra.mxu0 %v843_v16 }
 0x114   : > { %v953_v6 = vpop.permute.xlu0 %952 }
 0x115   : > { %v3281_v24 = vpop.permute.xlu1 %954  ;;  %1963 = vmatmul.mubr.bf16.vlgmr.msra.gmra.mrb[16].mxu1 %v3164_v9 }
 0x116   : > { %v984_v17 = vsel %vm982_vm6, %v953_v6, %v3281_v24  ;;  %1970 = vmatprep.mubr.bf16.mxu1 %v3173_v27 }
 0x117   : > { %1792 = vmatprep.subr.bf16.mxu0 %v984_v17 }
 0x118   : > { %v1104_v18 = vpop.permute.xlu0 %1103 }
 0x119   : > { %v1106_v36 = vpop.permute.xlu1 %1105 }
 0x11a   : > { %v1134_v25 = vsel %vm1131_vm7, %v1104_v18, %v1106_v36 }
 0x11b   : > { %2482 = vmatprep.subr.bf16.mxu1 %v1134_v25 }
 0x11c   : > { %v808_v19 = vpop.permute.xlu0 %807 }
 0x11d   : > { %v836_v29 = vsel %vm833_vm5, %v3178_v28, %v808_v19  ;;  %v951_v10 = vpop.permute.xlu1 %950  ;;  %1971 = vmatmul.mubr.bf16.gmra.mrb[20].mxu1 %v3198_v13 }
 0x11e   : > { %v983_v9 = vsel %vm982_vm6, %v951_v10, %v953_v6  ;;  %2483 = vmatpush3.bf16.msra.mxu1 %v836_v29  ;;  %1978 = vmatprep.mubr.bf16.mxu1 %v3206_v39 }
 0x11f   : > { %1793 = vmatpush1.bf16.msra.mxu0 %v983_v9 }
 0x120   : > { %v961_v27 = vpop.permute.xlu0 %960 }
 0x121   : > { %v3293_v32 = vpop.permute.xlu1 %962 }
 0x122   : > { %v987_v11 = vsel %vm982_vm6, %v961_v27, %v3293_v32 }
 0x123   : > { %1794 = vmatprep.subr.bf16.mxu0 %v987_v11 }
 0x124   : > { %v1112_v33 = vpop.permute.xlu0 %1111 }
 0x125   : > { %v1114_v34 = vpop.permute.xlu1 %1113  ;;  %1979 = vmatmul.mubr.bf16.gmra.mrb[24].mxu1 %v3226_v52 }
 0x126   : > { %v1137_v28 = vsel %vm1131_vm7, %v1112_v33, %v1114_v34  ;;  %1986 = vmatprep.mubr.bf16.mxu1 %v3233_v26 }
 0x127   : > { %2484 = vmatprep.subr.bf16.mxu1 %v1137_v28 }
 0x128   : > { %v816_v22 = vpop.permute.xlu0 %815 }
 0x129   : > { %v839_v35 = vsel %vm833_vm5, %v3209_v42, %v816_v22  ;;  %v959_v13 = vpop.permute.xlu1 %958 }
 0x12a   : > { %v986_v37 = vsel %vm982_vm6, %v959_v13, %v961_v27  ;;  %2485 = vmatpush3.bf16.msra.mxu1 %v839_v35 }
 0x12b   : > { %1795 = vmatpush1.bf16.msra.mxu0 %v986_v37  ;;  %v2668_v37 = vld [vmem:[%s3482_s1 + $0x8] ss:$20 sps:$4 sm:$0xff]  }
 0x12c   : > { %v969_v39 = vpop.permute.xlu0 %968 }
 0x12d   : > { %v3303_v40 = vpop.permute.xlu1 %970  ;;  %1987 = vmatmul.mubr.bf16.gmra.mrb[28].mxu1 %v3253_v1 }
 0x12e   : > { %v990_v12 = vsel %vm982_vm6, %v969_v39, %v3303_v40  ;;  %2027 = vmatprep.mubr.bf16.mxu1 %v3259_v62 }
 0x12f   : > { %1796 = vmatprep.subr.bf16.mxu0 %v990_v12 }
 0x130   : > { %v1120_v43 = vpop.permute.xlu0 %1119 }
 0x131   : > { %v1122_v45 = vpop.permute.xlu1 %1121 }
 0x132   : > { %v1140_v42 = vsel %vm1131_vm7, %v1120_v43, %v1122_v45 }
 0x133   : > { %2486 = vmatprep.subr.bf16.mxu1 %v1140_v42 }
 0x134   : > { %v824_v46 = vpop.permute.xlu0 %823 }
 0x135   : > { %v842_v41 = vsel %vm833_vm5, %v3243_v57, %v824_v46  ;;  %v967_v47 = vpop.permute.xlu1 %966 }
 0x136   : > { %v989_v48 = vsel %vm982_vm6, %v967_v47, %v969_v39  ;;  %2487 = vmatpush3.bf16.msra.mxu1 %v842_v41 }
 0x137   : > { %1797 = vmatpush1.bf16.msra.mxu0 %v989_v48  ;;  %v2673_v48 = vld [vmem:[%s3482_s1 + $0x30] ss:$20 sps:$4 sm:$0xff]  }
 0x138   : > { %v977_v49 = vpop.permute.xlu0 %976 }
 0x139   : > { %v979_v52 = vpop.permute.xlu1 %978 }
 0x13a   : > { %v993_v0 = vsel %vm982_vm6, %v977_v49, %v979_v52 }
 0x13b   : > { %1798 = vmatprep.subr.bf16.mxu0 %v993_v0 }
 0x13c   : > { %v1128_v26 = vpop.permute.xlu0 %1127 }
 0x13d   : > { %v1130_v2 = vpop.permute.xlu1 %1129 }
 0x13e   : > { %v1143_v53 = vsel %vm1131_vm7, %v1128_v26, %v1130_v2 }
 0x13f   : > { %2488 = vmatprep.subr.bf16.mxu1 %v1143_v53 }
 0x140   : > { %v832_v55 = vpop.permute.xlu0 %831 }
 0x141   : > { %v845_v51 = vsel %vm833_vm5, %v3270_v14, %v832_v55  ;;  %v975_v56 = vpop.permute.xlu1 %974 }
 0x142   : > { %v992_v57 = vsel %vm982_vm6, %v975_v56, %v977_v49  ;;  %2489 = vmatpush3.bf16.msra.mxu1 %v845_v51 }
 0x143   : > { %1799 = vmatpush1.bf16.msra.mxu0 %v992_v57  ;;  %v2676_v57 = vld [vmem:[%s3482_s1 + $0x58] ss:$20 sps:$4 sm:$0xff]  }
 0x144   : > { %v1102_v59 = vpop.permute.xlu0 %1101 }
 0x145   : > { %v1253_v60 = vpop.permute.xlu1 %1252  ;;  %v1133_v3 = vsel %vm1131_vm7, %v1102_v59, %v1104_v18 }
 0x146   : > { %1800 = vmatprep.subr.bf16.mxu0 %v1133_v3 }
 0x148   : > { %v1255_v1 = vpop.permute.xlu0 %1254 }
 0x149   : > { %v957_v62 = vpop.permute.xlu1 %956  ;;  %v1283_v5 = vsel %vm1280_vm8, %v1253_v60, %v1255_v1 }
 0x14a   : > { %v985_v31 = vsel %vm982_vm6, %v3281_v24, %v957_v62  ;;  %2490 = vmatprep.subr.bf16.mxu1 %v1283_v5 }
 0x14b   : > { %2491 = vmatpush3.bf16.msra.mxu1 %v985_v31 }
 0x14c   : > { %v1100_v61 = vpop.permute.xlu0 %1099 }
 0x14d   : > { %v1132_v63 = vsel %vm1131_vm7, %v1100_v61, %v1102_v59  ;;  %v1110_v20 = vpop.permute.xlu1 %1109  ;;  %v2679_v61 = vld [vmem:[%s3482_s1 + $0x80] ss:$20 sps:$4 sm:$0xff]  }
 0x14e   : > { %1801 = vmatpush1.bf16.msra.mxu0 %v1132_v63  ;;  %v1136_v14 = vsel %vm1131_vm7, %v1110_v20, %v1112_v33 }
 0x14f   : > { %1802 = vmatprep.subr.bf16.mxu0 %v1136_v14 }
 0x150   : > { %v1261_v21 = vpop.permute.xlu0 %1260 }
 0x151   : > { %v1263_v15 = vpop.permute.xlu1 %1262 }
 0x152   : > { %v1286_v4 = vsel %vm1280_vm8, %v1261_v21, %v1263_v15 }
 0x153   : > { %2492 = vmatprep.subr.bf16.mxu1 %v1286_v4 }
 0x154   : > { %v965_v23 = vpop.permute.xlu0 %964 }
 0x155   : > { %v988_v16 = vsel %vm982_vm6, %v3293_v32, %v965_v23  ;;  %v1108_v6 = vpop.permute.xlu1 %1107 }
 0x156   : > { %v1135_v24 = vsel %vm1131_vm7, %v1108_v6, %v1110_v20  ;;  %2493 = vmatpush3.bf16.msra.mxu1 %v988_v16 }
 0x157   : > { %1803 = vmatpush1.bf16.msra.mxu0 %v1135_v24 }
 0x158   : > { %v1118_v17 = vpop.permute.xlu0 %1117 }
 0x159   : > { %v1269_v18 = vpop.permute.xlu1 %1268  ;;  %v1139_v36 = vsel %vm1131_vm7, %v1118_v17, %v1120_v43 }
 0x15a   : > { %1804 = vmatprep.subr.bf16.mxu0 %v1139_v36 }
 0x15c   : > { %v1271_v25 = vpop.permute.xlu0 %1270 }
 0x15d   : > { %v973_v19 = vpop.permute.xlu1 %972  ;;  %v1289_v29 = vsel %vm1280_vm8, %v1269_v18, %v1271_v25 }
 0x15e   : > { %v991_v10 = vsel %vm982_vm6, %v3303_v40, %v973_v19  ;;  %2494 = vmatprep.subr.bf16.mxu1 %v1289_v29  ;;  %v2671_v40 = vld [vmem:[%s3482_s1 + $0x34] ss:$20 sps:$4 sm:$0xff]  }
 0x15f   : > { %2495 = vmatpush3.bf16.msra.mxu1 %v991_v10 }
 0x160   : > { %v1116_v9 = vpop.permute.xlu0 %1115 }
 0x161   : > { %v1138_v27 = vsel %vm1131_vm7, %v1116_v9, %v1118_v17  ;;  %v1126_v32 = vpop.permute.xlu1 %1125 }
 0x162   : > { %1805 = vmatpush1.bf16.msra.mxu0 %v1138_v27  ;;  %v1142_v11 = vsel %vm1131_vm7, %v1126_v32, %v1128_v26 }
 0x163   : > { %1806 = vmatprep.subr.bf16.mxu0 %v1142_v11 }
 0x164   : > { %v1277_v33 = vpop.permute.xlu0 %1276 }
 0x165   : > { %v1279_v34 = vpop.permute.xlu1 %1278 }
 0x166   : > { %v1292_v28 = vsel %vm1280_vm8, %v1277_v33, %v1279_v34 }
 0x167   : > { %2496 = vmatprep.subr.bf16.mxu1 %v1292_v28 }
 0x168   : > { %v981_v22 = vpop.permute.xlu0 %980 }
 0x169   : > { %v994_v35 = vsel %vm982_vm6, %v979_v52, %v981_v22  ;;  %v1124_v13 = vpop.permute.xlu1 %1123  ;;  %v2674_v52 = vld [vmem:[%s3482_s1 + $0x5c] ss:$20 sps:$4 sm:$0xff]  }
 0x16a   : > { %v1141_v39 = vsel %vm1131_vm7, %v1124_v13, %v1126_v32  ;;  %2497 = vmatpush3.bf16.msra.mxu1 %v994_v35 }
 0x16b   : > { %1807 = vmatpush1.bf16.msra.mxu0 %v1141_v39 }
 0x16c   : > { %v1251_v12 = vpop.permute.xlu0 %1250 }
 0x16d   : > { %v1249_v43 = vpop.permute.xlu1 %1248  ;;  %2028 = vmatmul.mubr.bf16.vlgmr.msra.gmra.mrb[32].mxu1 %v2668_v37  ;;  %v1282_v45 = vsel %vm1280_vm8, %v1251_v12, %v1253_v60  ;;  %v2677_v60 = vld [vmem:[%s3482_s1 + $0x84] ss:$20 sps:$4 sm:$0xff]  }
 0x16e   : > { %v1281_v42 = vsel %vm1280_vm8, %v1249_v43, %v1251_v12  ;;  %1808 = vmatprep.subr.bf16.mxu0 %v1282_v45  ;;  %2035 = vmatprep.mubr.bf16.mxu1 %v2671_v40 }
 0x16f   : > { %1809 = vmatpush1.bf16.msra.mxu0 %v1281_v42 }
 0x170   : > { %v1259_v46 = vpop.permute.xlu0 %1258 }
 0x171   : > { %v1257_v41 = vpop.permute.xlu1 %1256  ;;  %v1285_v47 = vsel %vm1280_vm8, %v1259_v46, %v1261_v21 }
 0x172   : > { %v1284_v49 = vsel %vm1280_vm8, %v1257_v41, %v1259_v46  ;;  %1810 = vmatprep.subr.bf16.mxu0 %v1285_v47 }
 0x173   : > { %1811 = vmatpush1.bf16.msra.mxu0 %v1284_v49 }
 0x174   : > { %v1267_v0 = vpop.permute.xlu0 %1266 }
 0x175   : > { %v1265_v26 = vpop.permute.xlu1 %1264  ;;  %2036 = vmatmul.mubr.bf16.gmra.mrb[36].mxu1 %v2673_v48  ;;  %v1288_v2 = vsel %vm1280_vm8, %v1267_v0, %v1269_v18 }
 0x176   : > { %v1287_v53 = vsel %vm1280_vm8, %v1265_v26, %v1267_v0  ;;  %1812 = vmatprep.subr.bf16.mxu0 %v1288_v2  ;;  %2043 = vmatprep.mubr.bf16.mxu1 %v2674_v52 }
 0x177   : > { %1813 = vmatpush1.bf16.msra.mxu0 %v1287_v53 }
 0x178   : > { %v1275_v55 = vpop.permute.xlu0 %1274 }
 0x179   : > { %v1273_v51 = vpop.permute.xlu1 %1272  ;;  %v1291_v56 = vsel %vm1280_vm8, %v1275_v55, %v1277_v33 }
 0x17a   : > { %v1290_v59 = vsel %vm1280_vm8, %v1273_v51, %v1275_v55  ;;  %1814 = vmatprep.subr.bf16.mxu0 %v1291_v56 }
 0x17b   : > { %1815 = vmatpush1.bf16.msra.mxu0 %v1290_v59 }
 0x17c   : > { %v1404_v3 = vpop.permute.xlu0 %1403 }
 0x17d   : > { %v1412_v1 = vpop.permute.xlu1 %1411  ;;  %2044 = vmatmul.mubr.bf16.gmra.mrb[40].mxu1 %v2676_v57  ;;  %v1432_v62 = vsel %vm1429_vm2, %v2985_v44, %v1404_v3 }
 0x17e   : > { %1817 = vmatmul.mubr.bf16.vlgmr.msra.gmra.mrb[0].mxu0 %v2668_v37  ;;  %2530 = vmatprep.subr.bf16.mxu1 %v1432_v62  ;;  %v1435_v5 = vsel %vm1429_vm2, %v3007_v54, %v1412_v1 }
 0x17f   : > { %2531 = vmatpush3.bf16.msra.mxu1 %v1432_v62  ;;  %2051 = vmatprep.mubr.bf16.mxu1 %v2677_v60 }
 0x180   : > { %v1420_v31 = vpop.permute.xlu0 %1419  ;;  %2532 = vmatprep.subr.bf16.mxu1 %v1435_v5  ;;  %1826 = vmatprep.mubr.bf16.mxu0 %v2671_v40 }
 0x181   : > { %v1438_v63 = vsel %vm1429_vm2, %v3029_v7, %v1420_v31  ;;  %v1428_v20 = vpop.permute.xlu1 %1427 }
 0x182   : > { %v1441_v44 = vsel %vm1429_vm2, %v3051_v30, %v1428_v20 }
 0x183   : > { %2533 = vmatpush3.bf16.msra.mxu1 %v1435_v5 }
 0x184   : > { %2534 = vmatprep.subr.bf16.mxu1 %v1438_v63 }
 0x185   : > { %2052 = vmatmul.mubr.bf16.gmra.mrb[44].mxu1 %v2679_v61 }
 0x186   : > { %1827 = vmatmul.mubr.bf16.gmra.mrb[4].mxu0 %v2673_v48  ;;  %2538 = vmatprep.mubr.msk.bf16.mxu1 %vm1698_vm3, %v3068_v38 }
 0x187   : > { %2535 = vmatpush3.bf16.msra.mxu1 %v1438_v63  ;;  %1836 = vmatprep.mubr.bf16.mxu0 %v2674_v52 }
 0x188   : > { %2536 = vmatprep.subr.bf16.mxu1 %v1441_v44 }
 0x18b   : > { %2537 = vmatpush3.bf16.msra.mxu1 %v1441_v44 }
 0x18e   : > { %1837 = vmatmul.mubr.bf16.gmra.mrb[8].mxu0 %v2676_v57  ;;  %2539 = vmatmul.mubr.msk.bf16.vlgmr.msra.gmra.mrb[48].mxu1 %vm1698_vm3, %v3093_v50 }
 0x18f   : > { %1846 = vmatprep.mubr.bf16.mxu0 %v2677_v60  ;;  %2542 = vmatprep.mubr.msk.bf16.mxu1 %vm1698_vm3, %v3117_v58 }
 0x196   : > { %1847 = vmatmul.mubr.bf16.gmra.mrb[12].mxu0 %v2679_v61  ;;  %2543 = vmatmul.mubr.msk.bf16.gmra.mrb[52].mxu1 %vm1698_vm3, %v3141_v8 }
 0x1a2   : > { %v1891_v54 = vpop.f32.mrb[0].mxu1 }
 0x1a3   : > { %v3382_v7 = vpop.f32.mrb[1].mxu1 }
 0x1a4   : > { %v3384_v38 = vpop.f32.mrb[2].mxu1 }
 0x1a5   : > { %v3386_v30 = vpop.f32.mrb[3].mxu1 }
 0x1ab   : > { %v3388_v14 = vpop.f32.mrb[4].mxu1 }
 0x1ac   : > { %v3390_v21 = vpop.f32.mrb[5].mxu1 }
 0x1ad   : > { %v3392_v50 = vpop.f32.mrb[6].mxu1 }
 0x1ae   : > { %v3394_v15 = vpop.f32.mrb[7].mxu1 }
 0x1b3   : > { %v3396_v58 = vpop.f32.mrb[8].mxu1 }
 0x1b4   : > { %v3398_v4 = vpop.f32.mrb[9].mxu1 }
 0x1b5   : > { %v3400_v8 = vpop.f32.mrb[10].mxu1 }
 0x1b6   : > { %v3402_v23 = vpop.f32.mrb[11].mxu1 }
 0x1bb   : > { %v3404_v16 = vpop.f32.mrb[12].mxu1 }
 0x1bc   : > { %v3406_v6 = vpop.f32.mrb[13].mxu1 }
 0x1bd   : > { %v3408_v24 = vpop.f32.mrb[14].mxu1 }
 0x1be   : > { %v3410_v17 = vpop.f32.mrb[15].mxu1 }
 0x1e8   : > { %v2458_v18 = vpop.f32.mrb[16].mxu1 }
 0x1e9   : > { %v2459_v36 = vpop.f32.mrb[17].mxu1 }
 0x1ea   : > { %v2460_v25 = vadd.f32 %v2459_v36, %v2458_v18  ;;  %v2461_v19 = vpop.f32.mrb[18].mxu1 }
 0x1eb   : > { %v2462_v29 = vpop.f32.mrb[19].mxu1 }
 0x1ec   : > { %v2463_v10 = vadd.f32 %v2462_v29, %v2461_v19 }
 0x1f0   : > { %v2464_v9 = vpop.f32.mrb[20].mxu1 }
 0x1f1   : > { %v2465_v27 = vpop.f32.mrb[21].mxu1 }
 0x1f2   : > { %v2466_v32 = vadd.f32 %v2465_v27, %v2464_v9  ;;  %v2467_v11 = vpop.f32.mrb[22].mxu1 }
 0x1f3   : > { %v2468_v33 = vpop.f32.mrb[23].mxu1 }
 0x1f4   : > { %v2469_v34 = vadd.f32 %v2468_v33, %v2467_v11 }
 0x1f8   : > { %v2470_v28 = vpop.f32.mrb[24].mxu1 }
 0x1f9   : > { %v2471_v22 = vpop.f32.mrb[25].mxu1 }
 0x1fa   : > { %v2472_v35 = vadd.f32 %v2471_v22, %v2470_v28  ;;  %v2473_v13 = vpop.f32.mrb[26].mxu1 }
 0x1fb   : > { %v2474_v37 = vpop.f32.mrb[27].mxu1 }
 0x1fc   : > { %v2475_v39 = vadd.f32 %v2474_v37, %v2473_v13 }
 0x200   : > { %v2476_v40 = vpop.f32.mrb[28].mxu1 }
 0x201   : > { %v2477_v12 = vpop.f32.mrb[29].mxu1 }
 0x202   : > { %v2478_v43 = vadd.f32 %v2477_v12, %v2476_v40  ;;  %v2479_v45 = vpop.f32.mrb[30].mxu1 }
 0x203   : > { %v2480_v42 = vpop.f32.mrb[31].mxu1 }
 0x204   : > { %v2481_v46 = vadd.f32 %v2480_v42, %v2479_v45 }
 0x240   : > { %v2498_v41 = vpop.f32.mrb[32].mxu1 }
 0x241   : > { %v2499_v47 = vpop.f32.mrb[33].mxu1 }
 0x242   : > { %v2500_v48 = vadd.f32 %v2499_v47, %v2498_v41  ;;  %v2501_v49 = vpop.f32.mrb[34].mxu1 }
 0x243   : > { %v2502_v52 = vpop.f32.mrb[35].mxu1 }
 0x244   : > { %v2503_v0 = vadd.f32 %v2502_v52, %v2501_v49  ;;  %v3412_v26 = vadd.f32 %v2500_v48, %v2460_v25 }
 0x246   : > { %v3414_v2 = vadd.f32 %v2503_v0, %v2463_v10 }
 0x248   : > { %v2504_v53 = vpop.f32.mrb[36].mxu1 }
 0x249   : > { %v2505_v55 = vpop.f32.mrb[37].mxu1 }
 0x24a   : > { %v2506_v51 = vadd.f32 %v2505_v55, %v2504_v53  ;;  %v2507_v56 = vpop.f32.mrb[38].mxu1 }
 0x24b   : > { %v2508_v57 = vpop.f32.mrb[39].mxu1 }
 0x24c   : > { %v2509_v59 = vadd.f32 %v2508_v57, %v2507_v56  ;;  %v2038_v60 = vadd.f32 %v2506_v51, %v2466_v32 }
 0x24e   : > { %v3416_v3 = vadd.f32 %v2509_v59, %v2469_v34 }
 0x250   : > { %v2510_v1 = vpop.f32.mrb[40].mxu1 }
 0x251   : > { %v1818_v62 = vpop.f32.mrb[0].mxu0  ;;  %v2511_v5 = vpop.f32.mrb[41].mxu1 }
 0x252   : > { %v2546_v31 = vadd.f32 %v1891_v54, %v1818_v62  ;;  %v2512_v61 = vadd.f32 %v2511_v5, %v2510_v1  ;;  %v1820_v63 = vpop.f32.mrb[1].mxu0  ;;  %v2513_v20 = vpop.f32.mrb[42].mxu1 }
 0x253   : > { %v2547_v44 = vadd.f32 %v3382_v7, %v1820_v63  ;;  %v1822_v18 = vpop.f32.mrb[2].mxu0  ;;  %v2514_v36 = vpop.f32.mrb[43].mxu1 }
 0x254   : > { %v2125_v25 = vmax.f32 %v2546_v31, 0.0  ;;  %v2548_v19 = vadd.f32 %v3384_v38, %v1822_v18  ;;  %v2515_v54 = vadd.f32 %v2514_v36, %v2513_v20  ;;  %v1824_v29 = vpop.f32.mrb[3].mxu0  ;;  %v3426_v10 = vadd.f32 %v2512_v61, %v2472_v35 }
 0x255   : > { %v2126_v9 = vmax.f32 %v2547_v44, 0.0  ;;  %v2549_v27 = vadd.f32 %v3386_v30, %v1824_v29 }
 0x256   : > { %2149 = vst [vmem:[%s3422_s22] sm:$0xff] %v2125_v25  ;;  %v2128_v32 = vmax.f32 %v2548_v19, 0.0  ;;  %v3430_v11 = vadd.f32 %v2515_v54, %v2475_v39 }
 0x257   : > { %2150 = vst [vmem:[%s3422_s22 + $0x8] sm:$0xff] %v2126_v9  ;;  %v2129_v33 = vmax.f32 %v2549_v27, 0.0 }
 0x258   : > { %2152 = vst [vmem:[%s3422_s22 + $0x18] sm:$0xff] %v2128_v32  ;;  %v2516_v7 = vpop.f32.mrb[44].mxu1 }
 0x259   : > { %2153 = vst [vmem:[%s3422_s22 + $0x20] sm:$0xff] %v2129_v33  ;;  %v1828_v34 = vpop.f32.mrb[4].mxu0  ;;  %v2517_v28 = vpop.f32.mrb[45].mxu1 }
 0x25a   : > { %v2550_v38 = vadd.f32 %v3388_v14, %v1828_v34  ;;  %v2518_v22 = vadd.f32 %v2517_v28, %v2516_v7  ;;  %v1830_v35 = vpop.f32.mrb[5].mxu0  ;;  %v2519_v13 = vpop.f32.mrb[46].mxu1 }
 0x25b   : > { %v2551_v30 = vadd.f32 %v3390_v21, %v1830_v35  ;;  %v1832_v37 = vpop.f32.mrb[6].mxu0  ;;  %v2520_v39 = vpop.f32.mrb[47].mxu1 }
 0x25c   : > { %v2131_v40 = vmax.f32 %v2550_v38, 0.0  ;;  %v2552_v12 = vadd.f32 %v3392_v50, %v1832_v37  ;;  %v2521_v45 = vadd.f32 %v2520_v39, %v2519_v13  ;;  %v1834_v42 = vpop.f32.mrb[7].mxu0  ;;  %v2054_v41 = vadd.f32 %v2518_v22, %v2478_v43 }
 0x25d   : > { %v2132_v47 = vmax.f32 %v2551_v30, 0.0  ;;  %v2553_v48 = vadd.f32 %v3394_v15, %v1834_v42 }
 0x25e   : > { %2155 = vst [vmem:[%s3422_s22 + $0x30] sm:$0xff] %v2131_v40  ;;  %v2134_v14 = vmax.f32 %v2552_v12, 0.0  ;;  %v2057_v49 = vadd.f32 %v2521_v45, %v2481_v46 }
 0x25f   : > { %2156 = vst [vmem:[%s3422_s22 + $0x38] sm:$0xff] %v2132_v47  ;;  %v2135_v52 = vmax.f32 %v2553_v48, 0.0 }
 0x260   : > { %2158 = vst [vmem:[%s3422_s22 + $0x48] sm:$0xff] %v2134_v14 }
 0x261   : > { %2159 = vst [vmem:[%s3422_s22 + $0x50] sm:$0xff] %v2135_v52  ;;  %v1838_v21 = vpop.f32.mrb[8].mxu0  ;;  %v2540_v0 = vpop.f32.mrb[48].mxu1 }
 0x262   : > { %v2554_v53 = vadd.f32 %v3396_v58, %v1838_v21  ;;  %v2103_v55 = vadd.f32 %v2540_v0, %v2038_v60  ;;  %v1840_v51 = vpop.f32.mrb[9].mxu0  ;;  %v2094_v50 = vpop.f32.mrb[49].mxu1 }
 0x263   : > { %v2555_v43 = vadd.f32 %v3398_v4, %v1840_v51  ;;  %v2095_v15 = vadd.f32 %v2094_v50, %v3412_v26  ;;  %v1842_v56 = vpop.f32.mrb[10].mxu0  ;;  %v2541_v46 = vpop.f32.mrb[50].mxu1 }
 0x264   : > { %v2137_v57 = vmax.f32 %v2554_v53, 0.0  ;;  %v2133_v59 = vmax.f32 %v2103_v55, 0.0  ;;  %v2556_v1 = vadd.f32 %v3400_v8, %v1842_v56  ;;  %v2106_v58 = vadd.f32 %v2541_v46, %v3416_v3  ;;  %v1844_v60 = vpop.f32.mrb[11].mxu0  ;;  %v2097_v62 = vpop.f32.mrb[51].mxu1 }
 0x265   : > { %v2138_v5 = vmax.f32 %v2555_v43, 0.0  ;;  %v2127_v4 = vmax.f32 %v2095_v15, 0.0  ;;  %v2557_v26 = vadd.f32 %v3402_v23, %v1844_v60  ;;  %v2098_v31 = vadd.f32 %v2097_v62, %v3414_v2 }
 0x266   : > { %2161 = vst [vmem:[%s3422_s22 + $0x60] sm:$0xff] %v2137_v57  ;;  %2157 = vst [vmem:[%s3422_s22 + $0x40] sm:$0xff] %v2133_v59  ;;  %v2140_v61 = vmax.f32 %v2556_v1, 0.0  ;;  %v2136_v63 = vmax.f32 %v2106_v58, 0.0 }
 0x267   : > { %2162 = vst [vmem:[%s3422_s22 + $0x68] sm:$0xff] %v2138_v5  ;;  %2151 = vst [vmem:[%s3422_s22 + $0x10] sm:$0xff] %v2127_v4  ;;  %v2141_v8 = vmax.f32 %v2557_v26, 0.0  ;;  %v2130_v20 = vmax.f32 %v2098_v31, 0.0 }
 0x268   : > { %2164 = vst [vmem:[%s3422_s22 + $0x78] sm:$0xff] %v2140_v61  ;;  %2160 = vst [vmem:[%s3422_s22 + $0x58] sm:$0xff] %v2136_v63 }
 0x269   : > { %2165 = vst [vmem:[%s3422_s22 + $0x80] sm:$0xff] %v2141_v8  ;;  %2154 = vst [vmem:[%s3422_s22 + $0x28] sm:$0xff] %v2130_v20  ;;  %v1848_v3 = vpop.f32.mrb[12].mxu0  ;;  %v2544_v44 = vpop.f32.mrb[52].mxu1 }
 0x26a   : > { %v2558_v18 = vadd.f32 %v3404_v16, %v1848_v3  ;;  %v2119_v36 = vadd.f32 %v2544_v44, %v2054_v41  ;;  %v1850_v23 = vpop.f32.mrb[13].mxu0  ;;  %v2110_v2 = vpop.f32.mrb[53].mxu1 }
 0x26b   : > { %v2559_v25 = vadd.f32 %v3406_v6, %v1850_v23  ;;  %v2111_v19 = vadd.f32 %v2110_v2, %v3426_v10  ;;  %v1852_v54 = vpop.f32.mrb[14].mxu0  ;;  %v2545_v29 = vpop.f32.mrb[54].mxu1 }
 0x26c   : > { %v2143_v9 = vmax.f32 %v2558_v18, 0.0  ;;  %v2145_v27 = vmax.f32 %v2119_v36, 0.0  ;;  %v2560_v32 = vadd.f32 %v3408_v24, %v1852_v54  ;;  %v2122_v33 = vadd.f32 %v2545_v29, %v2057_v49  ;;  %v1854_v16 = vpop.f32.mrb[15].mxu0  ;;  %v2113_v7 = vpop.f32.mrb[55].mxu1 }
 0x26d   : > { %v2144_v34 = vmax.f32 %v2559_v25, 0.0  ;;  %v2139_v28 = vmax.f32 %v2111_v19, 0.0  ;;  %v2561_v6 = vadd.f32 %v3410_v17, %v1854_v16  ;;  %v2114_v10 = vadd.f32 %v2113_v7, %v3430_v11 }
 0x26e   : > { %2167 = vst [vmem:[%s3422_s22 + $0x90] sm:$0xff] %v2143_v9  ;;  %2169 = vst [vmem:[%s3422_s22 + $0xa0] sm:$0xff] %v2145_v27  ;;  %v2146_v38 = vmax.f32 %v2560_v32, 0.0  ;;  %v2148_v22 = vmax.f32 %v2122_v33, 0.0 }
 0x26f   : > { %2168 = vst [vmem:[%s3422_s22 + $0x98] sm:$0xff] %v2144_v34  ;;  %2163 = vst [vmem:[%s3422_s22 + $0x70] sm:$0xff] %v2139_v28  ;;  %v2147_v24 = vmax.f32 %v2561_v6, 0.0  ;;  %v2142_v35 = vmax.f32 %v2114_v10, 0.0 }
 0x270   : > { %2170 = vst [vmem:[%s3422_s22 + $0xa8] sm:$0xff] %v2146_v38  ;;  %2172 = vst [vmem:[%s3422_s22 + $0xb8] sm:$0xff] %v2148_v22 }
 0x271   : > { %2171 = vst [vmem:[%s3422_s22 + $0xb0] sm:$0xff] %v2147_v24  ;;  %2166 = vst [vmem:[%s3422_s22 + $0x88] sm:$0xff] %v2142_v35 }
 0x272 PF: > { %s12_s11 = sadd.s32 1, %s2702_s11   ;;  %s3484_s9 = smov %s2698_s10 }
 0x273   : > { %p9_p5 = scmp.ge.s32.totalorder %s12_s11, 4   ;;  %s3485_s10 = smov %s3487_s12 }
 0x275   :  { %11 = sbr.rel (!%p9_p5) target bundleno = 2 (0x2), region = 58 }

</bundles_post_ra>
